<compile_context>
chip_gen: v5e
topology: v5e:2x2
jax: 0.10.0
libtpu: 0.0.40
codegen_flags: <defaults>
</compile_context>

<pallas_src>
import functools

import jax
import jax.numpy as jnp
from jax.experimental import pallas as pl
from jax.experimental.pallas import tpu as pltpu


def _device_budget():
    """(vmem_limit_bytes, row_tile_target) chosen per TPU generation."""
    try:
        cap = pltpu.get_tpu_info().vmem_capacity_bytes
    except Exception:  # introspection unavailable -> conservative default
        cap = 64 * 1024 * 1024
    if cap >= 128 * 1024 * 1024:        # v5e / v6e: 128 MiB VMEM -> bigger row tiles
        return 64 * 1024 * 1024, 512
    return 32 * 1024 * 1024, 256        # v7x-class: 64 MiB per TC -> stay conservative


_VMEM_LIMIT, _ROW_TILE = _device_budget()


def _pick_tile(dim, target, align):
    """Largest `align`-multiple divisor of `dim` that is <= target, else the full dim."""
    if dim <= target:
        return dim
    t = (target // align) * align
    while t >= align:
        if dim % t == 0:
            return t
        t -= align
    return dim  # no aligned divisor: fall back to full dim (vmem_limit_bytes guards us)


# ----------------------------------------------------------------------------
# Linear (full-K blocks) + bias (+ optional GELU) epilogue
# ----------------------------------------------------------------------------

def _linear_kernel(x_ref, w_ref, b_ref, o_ref, *, activation):
    y = jnp.dot(x_ref[...], w_ref[...], preferred_element_type=jnp.float32)
    y = y + b_ref[...]
    if activation == "gelu":
        # TODO(synk): HF DistilBERT uses exact erf GELU; tanh approximation used for robust
        # Mosaic lowering (EUP tanh).
        y = jax.nn.gelu(y, approximate=True)
    o_ref[...] = y.astype(o_ref.dtype)


def linear(x, w, b, activation=None, out_dtype=jnp.bfloat16, tm=None, tn=None):
    """(M, K) @ (K, N) + b, bf16 operands, f32 accumulation, bias/GELU fused."""
    M, K = x.shape
    N = w.shape[1]
    tm = _pick_tile(M, tm or _ROW_TILE, 8)
    tn = _pick_tile(N, tn or 768, 128)
    kernel = functools.partial(_linear_kernel, activation=activation)
    return pl.pallas_call(
        kernel,
        out_shape=jax.ShapeDtypeStruct((M, N), out_dtype),
        grid_spec=pltpu.PrefetchScalarGridSpec(
            num_scalar_prefetch=0,
            grid=(M // tm, N // tn),          # M-tiles leading (v7x megacore balance)
            in_specs=[
                pl.BlockSpec((tm, K), lambda i, j: (i, 0)),
                pl.BlockSpec((K, tn), lambda i, j: (0, j)),
                pl.BlockSpec((1, tn), lambda i, j: (0, j)),
            ],
            out_specs=pl.BlockSpec((tm, tn), lambda i, j: (i, j)),
        ),
        compiler_params=pltpu.CompilerParams(
            dimension_semantics=("parallel", "parallel"),
            vmem_limit_bytes=_VMEM_LIMIT,
        ),
        cost_estimate=pl.CostEstimate(
            flops=2 * M * N * K,
            transcendentals=M * N if activation == "gelu" else 0,
            bytes_accessed=2 * (M * K + K * N + M * N),
        ),
    )(x, w, b.reshape(1, N).astype(jnp.float32))


# ----------------------------------------------------------------------------
# Linear + bias + residual + LayerNorm epilogue (attention output projection)
# ----------------------------------------------------------------------------

def _linear_res_ln_kernel(x_ref, w_ref, b_ref, r_ref, g_ref, be_ref, o_ref, *, eps):
    y = jnp.dot(x_ref[...], w_ref[...], preferred_element_type=jnp.float32)
    y = y + b_ref[...] + r_ref[...].astype(jnp.float32)
    mu = jnp.mean(y, axis=-1, keepdims=True)
    var = jnp.mean(jnp.square(y - mu), axis=-1, keepdims=True)
    yn = (y - mu) * jax.lax.rsqrt(var + eps)
    o_ref[...] = (yn * g_ref[...] + be_ref[...]).astype(o_ref.dtype)


def linear_add_layernorm(x, w, b, res, gamma, beta, eps=1e-12, tm=None):
    """LayerNorm(x @ w + b + res); full K and full N per block."""
    M, K = x.shape
    N = w.shape[1]
    tm = _pick_tile(M, tm or _ROW_TILE, 8)
    kernel = functools.partial(_linear_res_ln_kernel, eps=eps)
    return pl.pallas_call(
        kernel,
        out_shape=jax.ShapeDtypeStruct((M, N), jnp.bfloat16),
        grid_spec=pltpu.PrefetchScalarGridSpec(
            num_scalar_prefetch=0,
            grid=(M // tm,),
            in_specs=[
                pl.BlockSpec((tm, K), lambda i: (i, 0)),
                pl.BlockSpec((K, N), lambda i: (0, 0)),
                pl.BlockSpec((1, N), lambda i: (0, 0)),
                pl.BlockSpec((tm, N), lambda i: (i, 0)),
                pl.BlockSpec((1, N), lambda i: (0, 0)),
                pl.BlockSpec((1, N), lambda i: (0, 0)),
            ],
            out_specs=pl.BlockSpec((tm, N), lambda i: (i, 0)),
        ),
        compiler_params=pltpu.CompilerParams(
            dimension_semantics=("parallel",),
            vmem_limit_bytes=_VMEM_LIMIT,
        ),
        cost_estimate=pl.CostEstimate(
            flops=2 * M * N * K + 10 * M * N,
            transcendentals=M,
            bytes_accessed=2 * (M * K + K * N + 2 * M * N),
        ),
    )(x, w, b.reshape(1, N).astype(jnp.float32), res,
      gamma.reshape(1, N).astype(jnp.float32), beta.reshape(1, N).astype(jnp.float32))


# ----------------------------------------------------------------------------
# Fully-fused FFN: up-proj + GELU + down-proj + residual + LayerNorm.
# The (tm, FFN) intermediate never leaves VMEM; FFN dim is the contraction grid axis.
# ----------------------------------------------------------------------------

def _ffn_kernel(x_ref, w1_ref, b1_ref, w2_ref, b2_ref, r_ref, g_ref, be_ref, o_ref,
                acc_ref, *, eps):
    k = pl.program_id(1)

    @pl.when(k == 0)
    def _():
        acc_ref[...] = jnp.zeros_like(acc_ref)

    h = jnp.dot(x_ref[...], w1_ref[...], preferred_element_type=jnp.float32) + b1_ref[...]
    h = jax.nn.gelu(h, approximate=True)  # TODO(synk): exact erf GELU in HF DistilBERT
    acc_ref[...] += jnp.dot(h.astype(jnp.bfloat16), w2_ref[...],
                            preferred_element_type=jnp.float32)

    @pl.when(k == pl.num_programs(1) - 1)
    def _():
        y = acc_ref[...] + b2_ref[...] + r_ref[...].astype(jnp.float32)
        mu = jnp.mean(y, axis=-1, keepdims=True)
        var = jnp.mean(jnp.square(y - mu), axis=-1, keepdims=True)
        yn = (y - mu) * jax.lax.rsqrt(var + eps)
        o_ref[...] = (yn * g_ref[...] + be_ref[...]).astype(o_ref.dtype)


def ffn_fused(x, w1, b1, w2, b2, gamma, beta, eps=1e-12, tm=None, fk=None):
    """LayerNorm(gelu(x @ w1 + b1) @ w2 + b2 + x)."""
    M, H = x.shape
    F = w1.shape[1]
    tm = _pick_tile(M, tm or _ROW_TILE, 8)
    fk = _pick_tile(F, fk or 512, 128)
    kernel = functools.partial(_ffn_kernel, eps=eps)
    return pl.pallas_call(
        kernel,
        out_shape=jax.ShapeDtypeStruct((M, H), jnp.bfloat16),
        grid_spec=pltpu.PrefetchScalarGridSpec(
            num_scalar_prefetch=0,
            grid=(M // tm, F // fk),
            in_specs=[
                pl.BlockSpec((tm, H), lambda i, k: (i, 0)),   # x (fetched once per M-tile)
                pl.BlockSpec((H, fk), lambda i, k: (0, k)),   # w1 chunk
                pl.BlockSpec((1, fk), lambda i, k: (0, k)),   # b1 chunk
                pl.BlockSpec((fk, H), lambda i, k: (k, 0)),   # w2 chunk
                pl.BlockSpec((1, H), lambda i, k: (0, 0)),    # b2
                pl.BlockSpec((tm, H), lambda i, k: (i, 0)),   # residual
                pl.BlockSpec((1, H), lambda i, k: (0, 0)),    # gamma
                pl.BlockSpec((1, H), lambda i, k: (0, 0)),    # beta
            ],
            out_specs=pl.BlockSpec((tm, H), lambda i, k: (i, 0)),
            scratch_shapes=[pltpu.VMEM((tm, H), jnp.float32)],
        ),
        compiler_params=pltpu.CompilerParams(
            dimension_semantics=("parallel", "arbitrary"),
            vmem_limit_bytes=_VMEM_LIMIT,
        ),
        cost_estimate=pl.CostEstimate(
            flops=4 * M * F * H + 10 * M * H,
            transcendentals=M * F + M,
            bytes_accessed=2 * (3 * M * H + 2 * H * F),
        ),
    )(x, w1, b1.reshape(1, F).astype(jnp.float32), w2,
      b2.reshape(1, H).astype(jnp.float32), x,
      gamma.reshape(1, H).astype(jnp.float32), beta.reshape(1, H).astype(jnp.float32))


# ----------------------------------------------------------------------------
# Row-tiled LayerNorm (embedding LN only; its output is also the attention residual)
# ----------------------------------------------------------------------------

def _ln_kernel(x_ref, g_ref, b_ref, o_ref, *, eps):
    x = x_ref[...].astype(jnp.float32)
    mu = jnp.mean(x, axis=-1, keepdims=True)
    var = jnp.mean(jnp.square(x - mu), axis=-1, keepdims=True)
    y = (x - mu) * jax.lax.rsqrt(var + eps)
    o_ref[...] = (y * g_ref[...] + b_ref[...]).astype(o_ref.dtype)


def layernorm(x, gamma, beta, eps=1e-12, tm=None):
    M, H = x.shape
    tm = _pick_tile(M, tm or 512, 8)
    kernel = functools.partial(_ln_kernel, eps=eps)
    return pl.pallas_call(
        kernel,
        out_shape=jax.ShapeDtypeStruct((M, H), jnp.bfloat16),
        grid_spec=pltpu.PrefetchScalarGridSpec(
            num_scalar_prefetch=0,
            grid=(M // tm,),
            in_specs=[
                pl.BlockSpec((tm, H), lambda i: (i, 0)),
                pl.BlockSpec((1, H), lambda i: (0, 0)),
                pl.BlockSpec((1, H), lambda i: (0, 0)),
            ],
            out_specs=pl.BlockSpec((tm, H), lambda i: (i, 0)),
        ),
        compiler_params=pltpu.CompilerParams(
            dimension_semantics=("parallel",),
            vmem_limit_bytes=_VMEM_LIMIT,
        ),
    )(x, gamma.reshape(1, H).astype(jnp.float32), beta.reshape(1, H).astype(jnp.float32))


# ----------------------------------------------------------------------------
# Attention: grid (batch, 128-lane head group, q-tile); Q/K/V read straight from the
# (B, S, 3H) fused-QKV tensor; ctx written straight into (B, S, H) (lane-dense stores).
# ----------------------------------------------------------------------------

def _attention_kernel(q_ref, k_ref, v_ref, m_ref, o_ref, *, scale, heads_per_group, dh):
    tq = q_ref.shape[1]
    S = k_ref.shape[1]
    hg = heads_per_group
    # (rows, hg*dh) -> (hg, rows, dh): head axis leading for the batched MXU einsum.
    q = jnp.swapaxes(q_ref[0].reshape(tq, hg, dh), 0, 1)     # (hg, tq, dh) bf16
    k = jnp.swapaxes(k_ref[0].reshape(S, hg, dh), 0, 1)      # (hg, S,  dh)
    v = jnp.swapaxes(v_ref[0].reshape(S, hg, dh), 0, 1)      # (hg, S,  dh)
    bias = m_ref[0]                                          # (1, S) additive f32 mask

    s = jnp.einsum("hqd,hkd->hqk", q, k, preferred_element_type=jnp.float32)
    s = s * scale + bias[None, :, :]                         # masked keys at -1e9
    s = s - jnp.max(s, axis=-1, keepdims=True)
    p = jnp.exp(s)
    p = p * pl.reciprocal(jnp.sum(p, axis=-1, keepdims=True), approx=True)
    ctx = jnp.einsum("hqk,hkd->hqd", p.astype(v.dtype), v,
                     preferred_element_type=jnp.float32)     # (hg, tq, dh)
    o_ref[0] = jnp.swapaxes(ctx, 0, 1).reshape(tq, hg * dh).astype(o_ref.dtype)


def mha_attention(qkv, mask_bias, n_heads, tq=128):
    """qkv: (B, S, 3H) laid out [Q | K | V]; mask_bias: (B, 1, S) additive -> ctx (B, S, H)."""
    B, S, three_h = qkv.shape
    H = three_h // 3
    dh = H // n_heads
    assert H % 128 == 0 and 128 % dh == 0, (
        "attention kernel assumes hidden % 128 == 0 and head_dim divides 128")
    group_w = 128                      # lanes handled per grid step (lane-dense loads/stores)
    hg = group_w // dh                 # heads per grid step
    G = H // group_w                   # number of head groups
    tq = _pick_tile(S, tq, 8)
    scale = 1.0 / float(dh) ** 0.5
    kernel = functools.partial(_attention_kernel, scale=scale, heads_per_group=hg, dh=dh)
    return pl.pallas_call(
        kernel,
        out_shape=jax.ShapeDtypeStruct((B, S, H), jnp.bfloat16),
        grid_spec=pltpu.PrefetchScalarGridSpec(
            num_scalar_prefetch=0,
            grid=(B, G, S // tq),      # q-tiles innermost -> K/V slabs DMA'd once per (b, g)
            in_specs=[
                pl.BlockSpec((1, tq, group_w), lambda b, g, qi: (b, qi, g)),        # Q slab
                pl.BlockSpec((1, S, group_w), lambda b, g, qi: (b, 0, G + g)),      # K slab
                pl.BlockSpec((1, S, group_w), lambda b, g, qi: (b, 0, 2 * G + g)),  # V slab
                pl.BlockSpec((1, 1, S), lambda b, g, qi: (b, 0, 0)),                # mask bias
            ],
            out_specs=pl.BlockSpec((1, tq, group_w), lambda b, g, qi: (b, qi, g)),
        ),
        compiler_params=pltpu.CompilerParams(
            dimension_semantics=("parallel", "parallel", "parallel"),
            vmem_limit_bytes=_VMEM_LIMIT,
        ),
        cost_estimate=pl.CostEstimate(
            flops=4 * B * H * S * S,
            transcendentals=B * n_heads * S * S,
            bytes_accessed=2 * 4 * B * S * H + 4 * B * S,
        ),
    )(qkv, qkv, qkv, mask_bias)


# ----------------------------------------------------------------------------
# Deterministic parameter initialization (synthetic "backbone" + classifier)
# ----------------------------------------------------------------------------

def init_params(key, vocab, max_pos, hidden, n_layers, n_heads, ffn):
    def nrm(k, shape, std=0.02, dtype=jnp.float32):
        return (std * jax.random.normal(k, shape)).astype(dtype)

    keys = iter(jax.random.split(key, 8 + n_layers * 8))
    p = {
        "word_emb": nrm(next(keys), (vocab, hidden)),
        "pos_emb": nrm(next(keys), (max_pos, hidden)),
        "emb_ln_g": jnp.ones((hidden,), jnp.float32),
        "emb_ln_b": jnp.zeros((hidden,), jnp.float32),
        "layers": [],
        # classifier head: nn.Linear(hidden, 1)
        "cls_w": nrm(next(keys), (hidden, 1)),
        "cls_b": jnp.zeros((1,), jnp.float32),
    }
    for _ in range(n_layers):
        layer = {
            # fused QKV projection, columns laid out [Q | K | V], heads contiguous (Dh each)
            "wqkv": nrm(next(keys), (hidden, 3 * hidden), dtype=jnp.bfloat16),
            "bqkv": jnp.zeros((3 * hidden,), jnp.float32),
            "wo": nrm(next(keys), (hidden, hidden), dtype=jnp.bfloat16),
            "bo": jnp.zeros((hidden,), jnp.float32),
            "ln1_g": jnp.ones((hidden,), jnp.float32), "ln1_b": jnp.zeros((hidden,), jnp.float32),
            "w1": nrm(next(keys), (hidden, ffn), dtype=jnp.bfloat16),
            "b1": jnp.zeros((ffn,), jnp.float32),
            "w2": nrm(next(keys), (ffn, hidden), dtype=jnp.bfloat16),
            "b2": jnp.zeros((hidden,), jnp.float32),
            "ln2_g": jnp.ones((hidden,), jnp.float32), "ln2_b": jnp.zeros((hidden,), jnp.float32),
        }
        p["layers"].append(layer)
    return p


# ----------------------------------------------------------------------------
# Forward pass (ReaderModel.forward with loss_fn=None, eval-mode dropout)
# ----------------------------------------------------------------------------

def reader_model_forward(params, input_ids, attention_mask, n_heads):
    B, S = input_ids.shape
    H = params["word_emb"].shape[1]

    # --- embeddings ---
    # TODO(synk): embedding-table gather kept in plain JAX (XLA gather), not a Pallas kernel.
    emb = jnp.take(params["word_emb"], input_ids, axis=0) + params["pos_emb"][:S][None, :, :]
    x2d = layernorm(emb.reshape(B * S, H), params["emb_ln_g"], params["emb_ln_b"])  # bf16

    # additive attention-mask bias: 0 for kept keys, -1e9 for masked keys
    mask_bias = ((attention_mask.astype(jnp.float32) - 1.0) * 1e9).reshape(B, 1, S)

    for layer in params["layers"]:
        # --- multi-head self-attention (fused QKV, no head transposes in HBM) ---
        qkv = linear(x2d, layer["wqkv"], layer["bqkv"])                      # (B*S, 3H) bf16
        ctx = mha_attention(qkv.reshape(B, S, 3 * H), mask_bias, n_heads)    # (B, S, H) bf16
        x2d = linear_add_layernorm(ctx.reshape(B * S, H), layer["wo"], layer["bo"], x2d,
                                   layer["ln1_g"], layer["ln1_b"])
        # --- fused feed-forward (+ residual + LayerNorm) ---
        x2d = ffn_fused(x2d, layer["w1"], layer["b1"], layer["w2"], layer["b2"],
                        layer["ln2_g"], layer["ln2_b"])

    hidden_state = x2d.reshape(B, S, H)
    cls_rep = hidden_state[:, 0].astype(jnp.float32)   # (B, H)
    x_cat = cls_rep                                    # torch.cat([cls_rep], dim=1) == identity
    dropped = x_cat                                    # nn.Dropout in eval mode == identity
    # classifier head in plain JAX: (B, H) @ (H, 1) is too small to amortize a kernel launch
    logits = jnp.dot(dropped, params["cls_w"]) + params["cls_b"]
    return logits


# ----------------------------------------------------------------------------
# Main
# ----------------------------------------------------------------------------

if __name__ == "__main__":
    # Small stand-in for DistilBERT: hidden a multiple of 128 with head_dim = 64 (as in the
    # real model), short sequence, tiny vocab, 2 layers.
    B, S = 2, 16
    VOCAB, MAX_POS = 100, 64
    HIDDEN, N_LAYERS, N_HEADS, FFN = 128, 2, 2, 256

    key = jax.random.PRNGKey(0)
    k_params, k_ids = jax.random.split(key)

    params = init_params(k_params, VOCAB, MAX_POS, HIDDEN, N_LAYERS, N_HEADS, FFN)
    input_ids = jax.random.randint(k_ids, (B, S), 0, VOCAB, dtype=jnp.int32)
    attention_mask = jnp.ones((B, S), dtype=jnp.int32)
    attention_mask = attention_mask.at[:, S - 2:].set(0)   # exercise the padding-mask path

    logits = reader_model_forward(params, input_ids, attention_mask, N_HEADS)
    logits = jax.block_until_ready(logits)

    assert logits.shape == (B, 1), logits.shape
    assert bool(jnp.all(jnp.isfinite(logits)))
    print("KERNEL_OK")
</pallas_src>

<mosaic_0001>
module attributes {stable_mosaic.version = 11 : i64} {
  func.func @_ln_kernel(%arg0: i32, %arg1: memref<32x128xf32, #tpu.memory_space<vmem>>, %arg2: memref<1x128xf32, #tpu.memory_space<vmem>>, %arg3: memref<1x128xf32, #tpu.memory_space<vmem>>, %arg4: memref<32x128xbf16, #tpu.memory_space<vmem>>) attributes {dimension_semantics = [#tpu.dimension_semantics<parallel>], iteration_bounds = array<i64: 1>, scalar_prefetch = 0 : i64, scratch_operands = 0 : i64, tpu.core_type = #tpu.core_type<tc>, window_params = [{transform_indices = @transform_0, window_bounds = array<i64: 32, 128>}, {pipeline_mode = #tpu.pipeline_mode<synchronous>, transform_indices = @transform_1, window_bounds = array<i64: 1, 128>}, {pipeline_mode = #tpu.pipeline_mode<synchronous>, transform_indices = @transform_2, window_bounds = array<i64: 1, 128>}, {transform_indices = @transform_3, window_bounds = array<i64: 32, 128>}]} {
    %c0 = arith.constant 0 : index
    %c0_0 = arith.constant 0 : index
    %0 = vector.load %arg1[%c0, %c0_0] : memref<32x128xf32, #tpu.memory_space<vmem>>, vector<32x128xf32>
    %cst = arith.constant dense<0.000000e+00> : vector<32xf32>
    %1 = vector.multi_reduction <add>, %0, %cst [1] : vector<32x128xf32> to vector<32xf32>
    %2 = vector.shape_cast %1 : vector<32xf32> to vector<32x1xf32>
    %cst_1 = arith.constant 1.280000e+02 : f32
    %3 = vector.broadcast %cst_1 : f32 to vector<32x1xf32>
    %4 = arith.divf %2, %3 : vector<32x1xf32>
    %5 = vector.broadcast %4 : vector<32x1xf32> to vector<32x128xf32>
    %6 = arith.subf %0, %5 : vector<32x128xf32>
    %7 = arith.mulf %6, %6 : vector<32x128xf32>
    %cst_2 = arith.constant dense<0.000000e+00> : vector<32xf32>
    %8 = vector.multi_reduction <add>, %7, %cst_2 [1] : vector<32x128xf32> to vector<32xf32>
    %9 = vector.shape_cast %8 : vector<32xf32> to vector<32x1xf32>
    %cst_3 = arith.constant 1.280000e+02 : f32
    %10 = vector.broadcast %cst_3 : f32 to vector<32x1xf32>
    %11 = arith.divf %9, %10 : vector<32x1xf32>
    %12 = vector.broadcast %4 : vector<32x1xf32> to vector<32x128xf32>
    %13 = arith.subf %0, %12 : vector<32x128xf32>
    %cst_4 = arith.constant 9.99999996E-13 : f32
    %14 = vector.broadcast %cst_4 : f32 to vector<32x1xf32>
    %15 = arith.addf %11, %14 : vector<32x1xf32>
    %16 = math.rsqrt %15 : vector<32x1xf32>
    %17 = vector.broadcast %16 : vector<32x1xf32> to vector<32x128xf32>
    %18 = arith.mulf %13, %17 : vector<32x128xf32>
    %c0_5 = arith.constant 0 : index
    %c0_6 = arith.constant 0 : index
    %19 = vector.load %arg2[%c0_5, %c0_6] : memref<1x128xf32, #tpu.memory_space<vmem>>, vector<1x128xf32>
    %20 = vector.broadcast %19 : vector<1x128xf32> to vector<32x128xf32>
    %21 = arith.mulf %18, %20 : vector<32x128xf32>
    %c0_7 = arith.constant 0 : index
    %c0_8 = arith.constant 0 : index
    %22 = vector.load %arg3[%c0_7, %c0_8] : memref<1x128xf32, #tpu.memory_space<vmem>>, vector<1x128xf32>
    %23 = vector.broadcast %22 : vector<1x128xf32> to vector<32x128xf32>
    %24 = arith.addf %21, %23 : vector<32x128xf32>
    %25 = arith.truncf %24 : vector<32x128xf32> to vector<32x128xbf16>
    %c0_9 = arith.constant 0 : index
    %c0_10 = arith.constant 0 : index
    %26 = vector.load %arg4[%c0_9, %c0_10] : memref<32x128xbf16, #tpu.memory_space<vmem>>, vector<32x128xbf16>
    tpu.vector_store %arg4[%c0_9, %c0_10], %25 {strides = array<i32>} : memref<32x128xbf16, #tpu.memory_space<vmem>>, vector<32x128xbf16>,
    return
  }
  func.func @transform_0(%arg0: i32) -> (i32, i32) {
    %c0_i32 = arith.constant 0 : i32
    %c0_i32_0 = arith.constant 0 : i32
    return %arg0, %c0_i32 : i32, i32
  }
  func.func @transform_1(%arg0: i32) -> (i32, i32) {
    %c0_i32 = arith.constant 0 : i32
    %c0_i32_0 = arith.constant 0 : i32
    %c0_i32_1 = arith.constant 0 : i32
    return %c0_i32, %c0_i32_0 : i32, i32
  }
  func.func @transform_2(%arg0: i32) -> (i32, i32) {
    %c0_i32 = arith.constant 0 : i32
    %c0_i32_0 = arith.constant 0 : i32
    %c0_i32_1 = arith.constant 0 : i32
    return %c0_i32, %c0_i32_0 : i32, i32
  }
  func.func @transform_3(%arg0: i32) -> (i32, i32) {
    %c0_i32 = arith.constant 0 : i32
    %c0_i32_0 = arith.constant 0 : i32
    return %arg0, %c0_i32 : i32, i32
  }
}

</mosaic_0001>

<bundles_post_ra>
// kernel: tpu_custom_call.1
= control target key start
LH: loop header
LB: loop body
LE: loop exit
PB: predicated region body
PF: predicated region fallthrough
CT: control target
= control target key end

     0   :  { %8 = vsyncpa [#allocation3], 0  ;;  %s349_s0 = inlined_call_operand.hbm [shape: f32[32,128], index: 0, kind: input, shape index: {}]   ;;  %s350_s1 = inlined_call_operand.hbm [shape: f32[1,128], index: 1, kind: input, shape index: {}]   ;;  %s351_s2 = inlined_call_operand.vmem [shape: f32[1,128], index: 2, kind: input, shape index: {}]   ;;  %s352_s3 = inlined_call_operand.hbm [shape: bf16[32,128], index: 3, kind: output, shape index: {}]  }
   0x1   :  { %9 = vsyncpa [#allocation6], 0 }
   0x2   :  { %10 = vsyncpa [#allocation4], 0  ;;  %s15_s14 = sshll.u32 %s349_s0, 4  ;;  %s289_s15 = smov [#allocation2]   ;;  %s16_s14 = int_to_ptr.hbm [resolvable:$true] %s15_s14 }
   0x3   :  { %s17_s16 = sshll.u32 %s289_s15, 4  ;;  %s29_s19 = sshll.u32 %s350_s1, 4  ;;  %s18_s16 = int_to_ptr.vmem [resolvable:$true] %s17_s16  ;;  %s30_s19 = int_to_ptr.hbm [resolvable:$true] %s29_s19 }
   0x4   :  { %s290_s20 = smov 128   ;;  %s291_s21 = smov 8  }
   0x5   :  { %23 = dma.hbm_to_vmem [thread:$0]  %s16_s14, 512, %s18_s16, [#allocation3], %s290_s20, %s290_s20, %s291_s21  }
   0x6   :  { %s292_s22 = smov [#allocation5]  }
   0x7   :  { %s31_s23 = sshll.u32 %s292_s22, 4  ;;  %s32_s23 = int_to_ptr.vmem [resolvable:$true] %s31_s23 }
   0x8   :  { %34 = dma.hbm_to_vmem [thread:$0]  %s30_s19, 16, %s32_s23, [#allocation6]  }
   0x9   :  { %283 = dma.done.wait [#allocation3], 512  }
   0xa   :  { %284 = vsyncadd [#allocation3], 4294966784 }
   0xb   :  { %285 = dma.done.wait [#allocation6], 16  }
   0xc   :  { %286 = vsyncadd [#allocation6], 4294967280  ;;  %v47_v0 = vld [vmem:[#allocation2 + $0x10] sm:$0xff]  ;;  %v45_v1 = vld [vmem:[#allocation2] sm:$0xff]  ;;  %v293_v4 = vmov 128.0   ;;  %s294_s24 = smov [#allocation7]  }
   0xd   :  { %53 = vadd.xlane.f32.xlu1 %v47_v0  ;;  %49 = vadd.xlane.f32.xlu0 %v45_v1  ;;  %v48_v2 = vld [vmem:[#allocation2 + $0x18] sm:$0xff]  ;;  %v46_v3 = vld [vmem:[#allocation2 + $0x8] sm:$0xff]  ;;  %201 = vrcp.f32 %v293_v4  ;;  %v199_v62 = vld [vmem:[#allocation5] ss:$0 sm:$0xff]  ;;  %s164_s25 = sshll.u32 %s294_s24, 4  ;;  %s166_s28 = sshll.u32 %s352_s3, 4  ;;  %s165_s25 = int_to_ptr.vmem [resolvable:$true] %s164_s25  ;;  %s167_s28 = int_to_ptr.hbm [resolvable:$true] %s166_s28 }
   0xe   :  { %s296_s29 = smov 4  }
  0x13   :  { %v202_v5 = vpop.eup %201 }
  0x14   :  { %v58_v6 = vmul.f32 128.0, %v202_v5  ;;  %vm62_vm0 = vweird.f32 %v202_v5 }
  0x15   :  { %55 = vadd.xlane.f32.xlu1 %v48_v2  ;;  %51 = vadd.xlane.f32.xlu0 %v46_v3 }
  0x16   :  { %v59_v7 = vsub.f32 1.0, %v58_v6 }
  0x18   :  { %v60_v8 = vmul.f32 %v202_v5, %v59_v7 }
  0x1a   :  { %v61_v9 = vadd.f32 %v202_v5, %v60_v8 }
  0x1c   :  { %v63_v10 = vsel %vm62_vm0, %v202_v5, %v61_v9  ;;  %v200_v5 = vld [vmem:[%s351_s2] ss:$0 sm:$0xff]  ;;  %s295_s2 = smov 64  }
  0x80   :  { %v54_v11 = vpop.xlane.xlu1 %53  ;;  %v50_v12 = vpop.xlane.xlu0 %49 }
  0x81   :  { %v66_v13 = vmul.f32 %v63_v10, %v54_v11  ;;  %v64_v14 = vmul.f32 %v63_v10, %v50_v12 }
  0x83   :  { %v323_v15 = vsub.f32 %v47_v0, %v66_v13  ;;  %v325_v16 = vsub.f32 %v45_v1, %v64_v14 }
  0x85   :  { %v74_v17 = vmul.f32 %v323_v15, %v323_v15  ;;  %v72_v18 = vmul.f32 %v325_v16, %v325_v16 }
  0x87   :  { %80 = vadd.xlane.f32.xlu0 %v74_v17  ;;  %76 = vadd.xlane.f32.xlu2 %v72_v18 }
  0x88   :  { %v56_v19 = vpop.xlane.xlu1 %55  ;;  %v52_v20 = vpop.xlane.xlu0 %51 }
  0x89   :  { %v67_v21 = vmul.f32 %v63_v10, %v56_v19  ;;  %v65_v22 = vmul.f32 %v63_v10, %v52_v20 }
  0x8b   :  { %v331_v23 = vsub.f32 %v48_v2, %v67_v21  ;;  %v333_v24 = vsub.f32 %v46_v3, %v65_v22 }
  0x8d   :  { %v75_v25 = vmul.f32 %v331_v23, %v331_v23  ;;  %v73_v26 = vmul.f32 %v333_v24, %v333_v24 }
  0x8f   :  { %82 = vadd.xlane.f32.xlu1 %v75_v25  ;;  %78 = vadd.xlane.f32.xlu2 %v73_v26 }
  0xfa   :  { %v77_v27 = vpop.xlane.xlu2 %76  ;;  %v81_v28 = vpop.xlane.xlu0 %80 }
  0xfb   :  { %v84_v29 = vmul.f32 %v77_v27, %v63_v10  ;;  %v86_v30 = vmul.f32 %v81_v28, %v63_v10 }
  0xfd   :  { %v88_v31 = vadd.f32 1e-12, %v84_v29  ;;  %v90_v32 = vadd.f32 1e-12, %v86_v30 }
  0xff   :  { %203 = vrsqrt.f32 %v88_v31  ;;  %vm118_vm3 = vweird.f32 %v90_v32  ;;  %vm98_vm4 = vweird.f32 %v88_v31 }
 0x100   :  { %205 = vrsqrt.f32 %v90_v32 }
 0x102   :  { %v83_v33 = vpop.xlane.xlu1 %82  ;;  %v79_v34 = vpop.xlane.xlu2 %78 }
 0x103   :  { %v87_v35 = vmul.f32 %v83_v33, %v63_v10  ;;  %v85_v36 = vmul.f32 %v79_v34, %v63_v10 }
 0x105   :  { %v204_v37 = vpop.eup %203  ;;  %v91_v38 = vadd.f32 1e-12, %v87_v35  ;;  %v89_v39 = vadd.f32 1e-12, %v85_v36 }
 0x106   :  { %v206_v40 = vpop.eup %205  ;;  %v93_v41 = vmul.f32 %v204_v37, %v88_v31  ;;  %vm99_vm2 = vweird.f32 %v204_v37 }
 0x107   :  { %v113_v42 = vmul.f32 %v206_v40, %v90_v32  ;;  %207 = vrsqrt.f32 %v91_v38  ;;  %vm119_vm1 = vweird.f32 %v206_v40  ;;  %vm100_vm6 = vmor %vm98_vm4, %vm99_vm2  ;;  %vm128_vm9 = vweird.f32 %v91_v38 }
 0x108   :  { %v94_v43 = vmul.f32 %v204_v37, %v93_v41  ;;  %209 = vrsqrt.f32 %v89_v39  ;;  %vm120_vm5 = vmor %vm118_vm3, %vm119_vm1  ;;  %vm108_vm11 = vweird.f32 %v89_v39 }
 0x109   :  { %v114_v44 = vmul.f32 %v206_v40, %v113_v42 }
 0x10a   :  { %v95_v45 = vmul.f32 0.5, %v94_v43 }
 0x10b   :  { %v115_v46 = vmul.f32 0.5, %v114_v44 }
 0x10c   :  { %v96_v47 = vsub.f32 1.5, %v95_v45 }
 0x10d   :  { %v208_v48 = vpop.eup %207  ;;  %v116_v49 = vsub.f32 1.5, %v115_v46 }
 0x10e   :  { %v210_v50 = vpop.eup %209  ;;  %v123_v51 = vmul.f32 %v208_v48, %v91_v38  ;;  %v97_v52 = vmul.f32 %v204_v37, %v96_v47  ;;  %vm129_vm7 = vweird.f32 %v208_v48 }
 0x10f   :  { %v117_v53 = vmul.f32 %v206_v40, %v116_v49  ;;  %v103_v54 = vmul.f32 %v210_v50, %v89_v39  ;;  %vm109_vm8 = vweird.f32 %v210_v50  ;;  %vm130_vm10 = vmor %vm128_vm9, %vm129_vm7 }
 0x110   :  { %v124_v55 = vmul.f32 %v208_v48, %v123_v51  ;;  %v101_v59 = vsel %vm100_vm6, %v204_v37, %v97_v52  ;;  %vm110_vm12 = vmor %vm108_vm11, %vm109_vm8 }
 0x111   :  { %v104_v56 = vmul.f32 %v210_v50, %v103_v54  ;;  %v121_v57 = vsel %vm120_vm5, %v206_v40, %v117_v53  ;;  %v132_v1 = vmul.f32 %v101_v59, %v325_v16 }
 0x112   :  { %v125_v58 = vmul.f32 0.5, %v124_v55  ;;  %v134_v63 = vmul.f32 %v121_v57, %v323_v15 }
 0x113   :  { %v105_v60 = vmul.f32 0.5, %v104_v56  ;;  %v140_v9 = vmul.f32 %v199_v62, %v132_v1 }
 0x114   :  { %v126_v61 = vsub.f32 1.5, %v125_v58  ;;  %v142_v6 = vmul.f32 %v199_v62, %v134_v63 }
 0x115   :  { %v106_v0 = vsub.f32 1.5, %v105_v60  ;;  %v148_v15 = vadd.f32 %v200_v5, %v140_v9 }
 0x116   :  { %v127_v2 = vmul.f32 %v208_v48, %v126_v61  ;;  %v150_v13 = vadd.f32 %v200_v5, %v142_v6 }
 0x117   :  { %v107_v3 = vmul.f32 %v210_v50, %v106_v0 }
 0x118   :  { %v131_v4 = vsel %vm130_vm10, %v208_v48, %v127_v2 }
 0x119   :  { %v135_v7 = vmul.f32 %v131_v4, %v331_v23  ;;  %v111_v8 = vsel %vm110_vm12, %v210_v50, %v107_v3 }
 0x11a   :  { %v133_v10 = vmul.f32 %v111_v8, %v333_v24 }
 0x11b   :  { %v143_v11 = vmul.f32 %v199_v62, %v135_v7 }
 0x11c   :  { %v141_v12 = vmul.f32 %v199_v62, %v133_v10 }
 0x11d   :  { %v151_v14 = vadd.f32 %v200_v5, %v143_v11 }
 0x11e   :  { %v149_v16 = vadd.f32 %v200_v5, %v141_v12 }
 0x11f   :  { %v188_v17 = vpack.c.bf16 %v151_v14, %v150_v13 }
 0x120   :  { %v183_v18 = vpack.c.bf16 %v149_v16, %v148_v15 }
 0x121   :  { %190 = vst [vmem:[#allocation7 + $0x8] sm:$0xff] %v188_v17  }
 0x122   :  { %184 = vst [vmem:[#allocation7] sm:$0xff] %v183_v18  }
 0x123   :  { %172 = dma.vmem_to_hbm [thread:$0]  %s165_s25, 256, %s167_s28, [#allocation4], %s295_s2, %s295_s2, %s296_s29  }
 0x124   :  { %287 = dma.done.wait [#allocation4], 256  }
 0x125   :  { %288 = vsyncadd [#allocation4], 4294967040 }
 0x126   :  { %177 = vsyncpa [#allocation3], 1 }
 0x127   :  { %178 = vsyncpa [#allocation6], 1 }
 0x128   :  { %179 = vsyncpa [#allocation4], 1 }

</bundles_post_ra>
